<compile_context>
chip_gen: v6e
topology: v6e:2x2x1
jax: 0.10.0
libtpu: 0.0.40
codegen_flags: <defaults>
</compile_context>

<pallas_src>
import functools
import math

import jax
import jax.numpy as jnp
from jax.experimental import pallas as pl
from jax.experimental.pallas import tpu as pltpu


# ---------------------------------------------------------------------------
# Fused kernel: whole encoder+decoder Linear+SiLU chain in one body.
# refs layout: [x_ref, w0, b0, w1, b1, ..., o_ref]
# ---------------------------------------------------------------------------
def _make_fused_ae_kernel(num_layers, compute_dtype, f32_tail, precision):
    compute_dtype = jnp.dtype(compute_dtype)
    bf16_tail = (not f32_tail) and compute_dtype != jnp.dtype(jnp.float32)

    def kernel(*refs):
        x_ref = refs[0]
        o_ref = refs[-1]
        h = x_ref[...]                               # (tm, D0)
        for layer in range(num_layers):              # static unroll
            w = refs[1 + 2 * layer][...]             # (Din, Dout), compute_dtype
            b = refs[2 + 2 * layer][...]             # (1, Dout), f32
            # MXU matmul, f32 accumulation.
            y = jnp.dot(h.astype(compute_dtype), w,
                        preferred_element_type=jnp.float32,
                        precision=precision)
            y = y + b                                # f32 bias add
            if bf16_tail:
                # v6e/v7x: bf16 VPU/EUP tail; result is already the next
                # layer's MXU operand dtype (no extra per-layer cast).
                yl = y.astype(compute_dtype)
                h = yl * jax.nn.sigmoid(yl)
            else:
                # v5e-safe path: SiLU in f32 (no bf16 VPU/EUP needed).
                h = y * jax.nn.sigmoid(y)
        o_ref[...] = h.astype(o_ref.dtype)

    return kernel


# ---------------------------------------------------------------------------
# Batch-tile heuristic: big tiles (>= 2048 rows when possible) and >= 4 grid
# steps so v7x's two TensorCores each get >= 2 steps to pipeline.
# ---------------------------------------------------------------------------
def _default_batch_tile(B):
    if B <= 2048:
        return None                                  # gridless path
    tile = 1 << int(math.floor(math.log2(max(B // 4, 512))))
    return int(min(8192, max(512, tile)))


# ---------------------------------------------------------------------------
# Wrapper: one fused pallas_call for the whole AE forward.
# ---------------------------------------------------------------------------
@functools.partial(
    jax.jit,
    static_argnames=("compute_dtype", "out_dtype", "batch_tile", "f32_tail",
                     "precision"))
def ae_forward_fused(x, params, *, compute_dtype=jnp.bfloat16, out_dtype=None,
                     batch_tile="auto", f32_tail=False, precision=None):
    """Full AE forward (encoder chain then decoder chain) in ONE Pallas kernel.

    params:        tuple of (w, b); w: (Din, Dout), b: (1, Dout) (or (Dout,)).
                   Pre-cast weights with cast_params() so no cast op runs per call.
    compute_dtype: MXU operand dtype (bf16 recommended on v5e/v6e/v7x).
    out_dtype:     output dtype (defaults to x.dtype; bf16 halves output HBM bytes).
    batch_tile:    "auto" (heuristic), None (force gridless), or int rows/tile.
    f32_tail:      keep bias-add/SiLU in f32 (use on v5e with bf16 operands).
    precision:     optional jnp.dot precision for the f32 operand path.
    """
    B, D0 = x.shape
    num_layers = len(params)
    d_out = params[-1][0].shape[1]
    out_dtype = x.dtype if out_dtype is None else out_dtype

    flat_inputs = [x]
    for (w, b) in params:
        # No-op at trace time if params were pre-cast with cast_params().
        flat_inputs.append(w.astype(compute_dtype))
        b2 = b if b.ndim == 2 else b.reshape(1, -1)
        flat_inputs.append(b2.astype(jnp.float32))

    kernel = _make_fused_ae_kernel(num_layers, compute_dtype, f32_tail,
                                   precision)
    out_shape = jax.ShapeDtypeStruct((B, d_out), out_dtype)

    tm = _default_batch_tile(B) if batch_tile == "auto" else batch_tile

    if tm is not None and B > tm:
        # Batch-tiled path: cdiv grid (partial last tile masked by Pallas),
        # whole feature chain resident per step, batch axis 'parallel' so it
        # shards across v7x's two TensorCores.
        tm = max(8, (int(tm) // 8) * 8)
        grid = (pl.cdiv(B, tm),)
        in_specs = [pl.BlockSpec((tm, D0), lambda i: (i, 0))]
        for (w, _) in params:
            in_specs.append(pl.BlockSpec(w.shape, lambda i: (0, 0)))
            in_specs.append(pl.BlockSpec((1, w.shape[1]), lambda i: (0, 0)))
        out_specs = pl.BlockSpec((tm, d_out), lambda i: (i, 0))
        return pl.pallas_call(
            kernel,
            out_shape=out_shape,
            grid=grid,
            in_specs=in_specs,
            out_specs=out_specs,
            compiler_params=pltpu.CompilerParams(
                dimension_semantics=("parallel",)),
        )(*flat_inputs)

    # Gridless path: every operand is a whole-array VMEM block; kernel runs once.
    vmem_spec = pl.BlockSpec(memory_space=pltpu.MemorySpace.VMEM)
    return pl.pallas_call(
        kernel,
        out_shape=out_shape,
        in_specs=[vmem_spec] * len(flat_inputs),
        out_specs=vmem_spec,
    )(*flat_inputs)


# ---------------------------------------------------------------------------
# Parameter init mimicking torch.nn.Linear default U(-1/sqrt(fan_in), ...).
# Weights stored (in_features, out_features); biases pre-shaped (1, out).
# ---------------------------------------------------------------------------
def init_ae_params(key, encoder_shape, decoder_shape, hidden_dim):
    enc_dims = (*encoder_shape, hidden_dim)
    dec_dims = (hidden_dim, *decoder_shape)
    layers = []
    for dims in (enc_dims, dec_dims):
        for i in range(len(dims) - 1):
            fan_in, fan_out = dims[i], dims[i + 1]
            key, kw, kb = jax.random.split(key, 3)
            bound = 1.0 / (fan_in ** 0.5)
            w = jax.random.uniform(kw, (fan_in, fan_out), jnp.float32,
                                   minval=-bound, maxval=bound)
            b = jax.random.uniform(kb, (1, fan_out), jnp.float32,
                                   minval=-bound, maxval=bound)
            layers.append((w, b))
    return tuple(layers)


def cast_params(params, compute_dtype=jnp.bfloat16):
    """One-time cast of weights to the MXU operand dtype (do at init time, not
    per forward call). Biases stay f32 and pre-shaped (1, Dout)."""
    out = []
    for (w, b) in params:
        b2 = b if b.ndim == 2 else b.reshape(1, -1)
        out.append((w.astype(compute_dtype), b2.astype(jnp.float32)))
    return tuple(out)


def ae_reference(x, params):
    """Pure-JAX reference (same math, same f32 params)."""
    h = x
    for (w, b) in params:
        y = h @ w.astype(jnp.float32) + b.astype(jnp.float32)
        h = y * jax.nn.sigmoid(y)
    return h


if __name__ == "__main__":
    # Network: encoder_shape=(64, 32), hidden_dim=16, decoder_shape=(32, 64)
    # => 64 -> 32 -> 16 -> 32 -> 64. Input x: (batch=8, 64).
    encoder_shape = (64, 32)
    decoder_shape = (32, 64)
    hidden_dim = 16
    batch = 8

    key = jax.random.PRNGKey(0)
    key, kx = jax.random.split(key)
    x = jax.random.normal(kx, (batch, encoder_shape[0]), dtype=jnp.float32)
    params_f32 = init_ae_params(key, encoder_shape, decoder_shape, hidden_dim)
    params_bf16 = cast_params(params_f32, jnp.bfloat16)   # one-time weight cast
    ref = ae_reference(x, params_f32)

    # 1) Gridless small-batch path, f32 MXU operands (exact-match path).
    out_f32 = jax.block_until_ready(
        ae_forward_fused(x, params_f32, compute_dtype=jnp.float32))
    assert out_f32.shape == (batch, decoder_shape[-1])
    assert jnp.allclose(out_f32, ref, atol=1e-4, rtol=1e-4)

    # 2) bf16 MXU operands + bf16 elementwise tail (v6e/v7x fast path),
    #    f32 accumulation via preferred_element_type.
    out_bf = jax.block_until_ready(
        ae_forward_fused(x, params_bf16, compute_dtype=jnp.bfloat16))
    assert jnp.allclose(out_bf, ref, atol=5e-2, rtol=5e-2)

    # 3) Large RAGGED batch: batch-tiled 'parallel' grid with pl.cdiv and a
    #    masked partial last tile (B=5000, tm=1024 -> 5 grid steps).
    key, kx2 = jax.random.split(key)
    B_big = 5000
    x_big = jax.random.normal(kx2, (B_big, encoder_shape[0]), dtype=jnp.float32)
    ref_big = ae_reference(x_big, params_f32)
    out_big = jax.block_until_ready(
        ae_forward_fused(x_big, params_f32, compute_dtype=jnp.float32,
                         batch_tile=1024))
    assert out_big.shape == (B_big, decoder_shape[-1])
    assert jnp.allclose(out_big, ref_big, atol=1e-4, rtol=1e-4)

    # 4) Same large batch, v5e-style combo: bf16 MXU operands, f32 SiLU tail,
    #    bf16 output to halve HBM write bytes on the memory-bound path.
    out_big_bf = jax.block_until_ready(
        ae_forward_fused(x_big, params_bf16, compute_dtype=jnp.bfloat16,
                         f32_tail=True, out_dtype=jnp.bfloat16))
    assert out_big_bf.dtype == jnp.bfloat16
    assert jnp.allclose(out_big_bf.astype(jnp.float32), ref_big,
                        atol=5e-2, rtol=5e-2)

    print("KERNEL_OK")
</pallas_src>

<mosaic_0001>
module attributes {stable_mosaic.version = 11 : i64} {
  func.func @kernel(%arg0: memref<8x64xf32, #tpu.memory_space<vmem>>, %arg1: memref<64x32xf32, #tpu.memory_space<vmem>>, %arg2: memref<1x32xf32, #tpu.memory_space<vmem>>, %arg3: memref<32x16xf32, #tpu.memory_space<vmem>>, %arg4: memref<1x16xf32, #tpu.memory_space<vmem>>, %arg5: memref<16x32xf32, #tpu.memory_space<vmem>>, %arg6: memref<1x32xf32, #tpu.memory_space<vmem>>, %arg7: memref<32x64xf32, #tpu.memory_space<vmem>>, %arg8: memref<1x64xf32, #tpu.memory_space<vmem>>, %arg9: memref<8x64xf32, #tpu.memory_space<vmem>>) attributes {dimension_semantics = [], scalar_prefetch = 0 : i64, scratch_operands = 0 : i64, tpu.core_type = #tpu.core_type<tc>} {
    %c0 = arith.constant 0 : index
    %c0_0 = arith.constant 0 : index
    %0 = vector.load %arg0[%c0, %c0_0] : memref<8x64xf32, #tpu.memory_space<vmem>>, vector<8x64xf32>
    %c0_1 = arith.constant 0 : index
    %c0_2 = arith.constant 0 : index
    %1 = vector.load %arg1[%c0_1, %c0_2] : memref<64x32xf32, #tpu.memory_space<vmem>>, vector<64x32xf32>
    %c0_3 = arith.constant 0 : index
    %c0_4 = arith.constant 0 : index
    %2 = vector.load %arg2[%c0_3, %c0_4] : memref<1x32xf32, #tpu.memory_space<vmem>>, vector<1x32xf32>
    %cst = arith.constant dense<0.000000e+00> : vector<8x32xf32>
    %3 = tpu.matmul %0, %1, %cst {dimension_numbers = #tpu.dot_dimension_numbers<[1], [0], [0], [1], [0, 0, 1, 1], [], []>} : vector<8x64xf32>, vector<64x32xf32>, vector<8x32xf32> -> vector<8x32xf32>
    %4 = vector.broadcast %2 : vector<1x32xf32> to vector<8x32xf32>
    %5 = arith.addf %3, %4 : vector<8x32xf32>
    %6 = arith.negf %5 : vector<8x32xf32>
    %7 = math.exp %6 : vector<8x32xf32>
    %cst_5 = arith.constant 1.000000e+00 : f32
    %8 = vector.broadcast %cst_5 : f32 to vector<8x32xf32>
    %9 = arith.addf %8, %7 : vector<8x32xf32>
    %10 = arith.divf %8, %9 : vector<8x32xf32>
    %11 = arith.mulf %5, %10 : vector<8x32xf32>
    %c0_6 = arith.constant 0 : index
    %c0_7 = arith.constant 0 : index
    %12 = vector.load %arg3[%c0_6, %c0_7] : memref<32x16xf32, #tpu.memory_space<vmem>>, vector<32x16xf32>
    %c0_8 = arith.constant 0 : index
    %c0_9 = arith.constant 0 : index
    %13 = vector.load %arg4[%c0_8, %c0_9] : memref<1x16xf32, #tpu.memory_space<vmem>>, vector<1x16xf32>
    %cst_10 = arith.constant dense<0.000000e+00> : vector<8x16xf32>
    %14 = tpu.matmul %11, %12, %cst_10 {dimension_numbers = #tpu.dot_dimension_numbers<[1], [0], [0], [1], [0, 0, 1, 1], [], []>} : vector<8x32xf32>, vector<32x16xf32>, vector<8x16xf32> -> vector<8x16xf32>
    %15 = vector.broadcast %13 : vector<1x16xf32> to vector<8x16xf32>
    %16 = arith.addf %14, %15 : vector<8x16xf32>
    %17 = arith.negf %16 : vector<8x16xf32>
    %18 = math.exp %17 : vector<8x16xf32>
    %cst_11 = arith.constant 1.000000e+00 : f32
    %19 = vector.broadcast %cst_11 : f32 to vector<8x16xf32>
    %20 = arith.addf %19, %18 : vector<8x16xf32>
    %21 = arith.divf %19, %20 : vector<8x16xf32>
    %22 = arith.mulf %16, %21 : vector<8x16xf32>
    %c0_12 = arith.constant 0 : index
    %c0_13 = arith.constant 0 : index
    %23 = vector.load %arg5[%c0_12, %c0_13] : memref<16x32xf32, #tpu.memory_space<vmem>>, vector<16x32xf32>
    %c0_14 = arith.constant 0 : index
    %c0_15 = arith.constant 0 : index
    %24 = vector.load %arg6[%c0_14, %c0_15] : memref<1x32xf32, #tpu.memory_space<vmem>>, vector<1x32xf32>
    %cst_16 = arith.constant dense<0.000000e+00> : vector<8x32xf32>
    %25 = tpu.matmul %22, %23, %cst_16 {dimension_numbers = #tpu.dot_dimension_numbers<[1], [0], [0], [1], [0, 0, 1, 1], [], []>} : vector<8x16xf32>, vector<16x32xf32>, vector<8x32xf32> -> vector<8x32xf32>
    %26 = vector.broadcast %24 : vector<1x32xf32> to vector<8x32xf32>
    %27 = arith.addf %25, %26 : vector<8x32xf32>
    %28 = arith.negf %27 : vector<8x32xf32>
    %29 = math.exp %28 : vector<8x32xf32>
    %cst_17 = arith.constant 1.000000e+00 : f32
    %30 = vector.broadcast %cst_17 : f32 to vector<8x32xf32>
    %31 = arith.addf %30, %29 : vector<8x32xf32>
    %32 = arith.divf %30, %31 : vector<8x32xf32>
    %33 = arith.mulf %27, %32 : vector<8x32xf32>
    %c0_18 = arith.constant 0 : index
    %c0_19 = arith.constant 0 : index
    %34 = vector.load %arg7[%c0_18, %c0_19] : memref<32x64xf32, #tpu.memory_space<vmem>>, vector<32x64xf32>
    %c0_20 = arith.constant 0 : index
    %c0_21 = arith.constant 0 : index
    %35 = vector.load %arg8[%c0_20, %c0_21] : memref<1x64xf32, #tpu.memory_space<vmem>>, vector<1x64xf32>
    %cst_22 = arith.constant dense<0.000000e+00> : vector<8x64xf32>
    %36 = tpu.matmul %33, %34, %cst_22 {dimension_numbers = #tpu.dot_dimension_numbers<[1], [0], [0], [1], [0, 0, 1, 1], [], []>} : vector<8x32xf32>, vector<32x64xf32>, vector<8x64xf32> -> vector<8x64xf32>
    %37 = vector.broadcast %35 : vector<1x64xf32> to vector<8x64xf32>
    %38 = arith.addf %36, %37 : vector<8x64xf32>
    %39 = arith.negf %38 : vector<8x64xf32>
    %40 = math.exp %39 : vector<8x64xf32>
    %cst_23 = arith.constant 1.000000e+00 : f32
    %41 = vector.broadcast %cst_23 : f32 to vector<8x64xf32>
    %42 = arith.addf %41, %40 : vector<8x64xf32>
    %43 = arith.divf %41, %42 : vector<8x64xf32>
    %44 = arith.mulf %38, %43 : vector<8x64xf32>
    %c0_24 = arith.constant 0 : index
    %c0_25 = arith.constant 0 : index
    %45 = vector.load %arg9[%c0_24, %c0_25] : memref<8x64xf32, #tpu.memory_space<vmem>>, vector<8x64xf32>
    tpu.vector_store %arg9[%c0_24, %c0_25], %44 {strides = array<i32>} : memref<8x64xf32, #tpu.memory_space<vmem>>, vector<8x64xf32>,
    return
  }
}

</mosaic_0001>

<bundles_post_ra>
// kernel: ae_forward_fused.1
= control target key start
LH: loop header
LB: loop body
LE: loop exit
PB: predicated region body
PF: predicated region fallthrough
CT: control target
= control target key end

     0   :  { %v541_v1 = vmov 0.0   ;;  %vm542_vm0 = vmmov 0   ;;  %s696_s0 = inlined_call_operand.vmem [shape: f32[8,64], index: 0, kind: input, shape index: {}]   ;;  %s697_s1 = inlined_call_operand.vmem [shape: f32[64,32], index: 1, kind: input, shape index: {}]   ;;  %s698_s2 = inlined_call_operand.vmem [shape: f32[1,32], index: 2, kind: input, shape index: {}]   ;;  %s699_s3 = inlined_call_operand.vmem [shape: f32[32,16], index: 3, kind: input, shape index: {}]   ;;  %s700_s4 = inlined_call_operand.vmem [shape: f32[1,16], index: 4, kind: input, shape index: {}]   ;;  %s701_s5 = inlined_call_operand.vmem [shape: f32[16,32], index: 5, kind: input, shape index: {}]   ;;  %s702_s6 = inlined_call_operand.vmem [shape: f32[1,32], index: 6, kind: input, shape index: {}]   ;;  %s703_s7 = inlined_call_operand.vmem [shape: f32[32,64], index: 7, kind: input, shape index: {}]   ;;  %s704_s8 = inlined_call_operand.vmem [shape: f32[1,64], index: 8, kind: input, shape index: {}]   ;;  %s705_s9 = inlined_call_operand.hbm [shape: f32[8,64], index: 9, kind: output, shape index: {}]  }
   0x1   :  { %v41_v0 = vld [vmem:[%s697_s1 + $0x38] sm:$0xff]  ;;  %452 = vmatprep.subr.mxu0 %v541_v1  ;;  %v40_v2 = vld [vmem:[%s697_s1 + $0x30] sm:$0xff]  ;;  %468 = vmatprep.mubr.msk.f32.mxu0 %vm542_vm0, %v541_v1  ;;  %v39_v3 = vld [vmem:[%s697_s1 + $0x28] sm:$0xff] }
   0x2   :  { %453 = vmatpush3.msra.mxu0 %v41_v0  ;;  %471 = vmatprep.subr.mxu1 %v541_v1 }
   0x3   :  { %454 = vmatprep.subr.mxu0 %v541_v1  ;;  %479 = vmatprep.mubr.msk.f32.mxu1 %vm542_vm0, %v541_v1 }
   0x4   :  { %14 = vsyncpa [#allocation3], 0  ;;  %455 = vmatpush3.msra.mxu0 %v40_v2  ;;  %v38_v4 = vld [vmem:[%s697_s1 + $0x20] sm:$0xff]  ;;  %v37_v5 = vld [vmem:[%s697_s1 + $0x18] sm:$0xff]  ;;  %vm49_vm1 = vcmask 523264   ;;  %vm141_vm2 = vcmask 261120  }
   0x5   :  { %456 = vmatprep.subr.mxu0 %v541_v1  ;;  %v36_v6 = vld [vmem:[%s697_s1 + $0x10] sm:$0xff]  ;;  %v35_v7 = vld [vmem:[%s697_s1 + $0x8] sm:$0xff]  ;;  %v34_v8 = vld [vmem:[%s697_s1] sm:$0xff]  ;;  %vm231_vm3 = vcmask 130048  }
   0x6   :  { %457 = vmatpush3.msra.mxu0 %v39_v3  ;;  %v33_v9 = vld [vmem:[%s696_s0] sm:$0xff]  ;;  %v133_v10 = vld [vmem:[%s699_s3 + $0x18] sm:$0xff]  ;;  %v132_v11 = vld [vmem:[%s699_s3 + $0x10] sm:$0xff] }
   0x7   :  { %458 = vmatprep.subr.mxu0 %v541_v1  ;;  %472 = vmatpush3.msra.mxu1 %v133_v10  ;;  %v131_v12 = vld [vmem:[%s699_s3 + $0x8] sm:$0xff]  ;;  %v130_v13 = vld [vmem:[%s699_s3] sm:$0xff]  ;;  %v315_v34 = vld [vmem:[%s703_s7 + $0x18] sm:$0xff] }
   0x8   :  { %459 = vmatpush3.msra.mxu0 %v38_v4  ;;  %473 = vmatprep.subr.mxu1 %v541_v1  ;;  %v418_v14 = vld [vmem:[%s698_s2] ss:$0 sm:$0xff]  ;;  %v223_v23 = vld [vmem:[%s701_s5 + $0x8] sm:$0xff]  ;;  %v314_v35 = vld [vmem:[%s703_s7 + $0x10] sm:$0xff] }
   0x9   :  { %460 = vmatprep.subr.mxu0 %v541_v1  ;;  %474 = vmatpush3.msra.mxu1 %v132_v11  ;;  %v222_v24 = vld [vmem:[%s701_s5] sm:$0xff]  ;;  %v313_v36 = vld [vmem:[%s703_s7 + $0x8] sm:$0xff] }
   0xa   :  { %461 = vmatpush3.msra.mxu0 %v37_v5  ;;  %475 = vmatprep.subr.mxu1 %v541_v1  ;;  %v421_v25 = vld [vmem:[%s700_s4] ss:$0 sm:$0xff] }
   0xb   :  { %462 = vmatprep.subr.mxu0 %v541_v1  ;;  %476 = vmatpush3.msra.mxu1 %v131_v12  ;;  %v312_v37 = vld [vmem:[%s703_s7] sm:$0xff] }
   0xc   :  { %463 = vmatpush3.msra.mxu0 %v36_v6  ;;  %477 = vmatprep.subr.mxu1 %v541_v1  ;;  %v424_v38 = vld [vmem:[%s702_s6] ss:$0 sm:$0xff]  ;;  %s543_s6 = smov [#allocation2]  }
   0xd   :  { %464 = vmatprep.subr.mxu0 %v541_v1  ;;  %478 = vmatpush3.msra.mxu1 %v130_v13  ;;  %v427_v47 = vld [vmem:[%s704_s8] ss:$0 sm:$0xff]  ;;  %s410_s7 = sshll.u32 %s543_s6, 4  ;;  %s411_s7 = int_to_ptr.vmem [resolvable:$true] %s410_s7 }
   0xe   :  { %465 = vmatpush3.msra.mxu0 %v35_v7  ;;  %482 = vmatprep.subr.mxu1 %v541_v1  ;;  %s519_s28 = scalar_lea.vmem %s411_s7, 128  ;;  %p524_p1 = scmp.lt.s32.totalorder %s411_s7, %s411_s7 }
   0xf   :  { %466 = vmatprep.subr.mxu0 %v541_v1  ;;  %p520_p0 = scmp.ne.s32.totalorder %s411_s7, %s519_s28  ;;  %p525_p2 = scmp.lt.s32.totalorder %s519_s28, %s519_s28 }
  0x10   :  { %467 = vmatpush3.msra.mxu0 %v34_v8 }
  0x11   :  { %469 = vmatmul.mubr.msk.f32.vlgmr.msra.gmra.mxu0 %vm49_vm1, %v33_v9  ;;  %p526_p3 = por %p525_p2, %p524_p1 }
  0x13   :  { %p527_p4 = pnand %p526_p3, %p520_p0 }
  0xd1   :  { %v119_v15 = vpop.f32.mrf.mxu0 }
  0xd2   :  { %v120_v16 = vadd.f32 %v418_v14, %v119_v15 }
  0xd3   :  { %v470_v17 = vpop.f32.mrf.mxu0 }
  0xd4   :  { %v420_v18 = vmul.f32 -1.442695, %v120_v16 }
  0xd6   :  { %503 = vpow2.f32 %v420_v18 }
  0xe3   :  { %v504_v19 = vpop.eup %503 }
  0xe4   :  { %v126_v20 = vadd.f32 1.0, %v504_v19 }
  0xe6   :  { %505 = vrcp.f32 %v126_v20 }
  0xf3   :  { %v506_v21 = vpop.eup %505 }
  0xf4   :  { %v129_v22 = vmul.f32 %v506_v21, %v120_v16 }
  0xf6   :  { %480 = vmatmul.mubr.msk.f32.vlgmr.msra.gmra.mxu1 %vm141_vm2, %v129_v22 }
  0xf7   :  { %486 = vmatprep.mubr.msk.f32.mxu1 %vm542_vm0, %v541_v1  ;;  %483 = vmatpush3.msra.mxu1 %v223_v23 }
  0xf8   :  { %484 = vmatprep.subr.mxu1 %v541_v1 }
  0xf9   :  { %485 = vmatpush3.msra.mxu1 %v222_v24 }
  0xfa   :  { %489 = vmatprep.subr.mxu1 %v541_v1 }
 0x1b6   :  { %v211_v26 = vpop.f32.mrf.mxu1 }
 0x1b7   :  { %v212_v27 = vadd.f32 %v421_v25, %v211_v26 }
 0x1b8   :  { %v481_v28 = vpop.f32.mrf.mxu1 }
 0x1b9   :  { %v423_v29 = vmul.f32 -1.442695, %v212_v27 }
 0x1bb   :  { %507 = vpow2.f32 %v423_v29 }
 0x1c8   :  { %v508_v30 = vpop.eup %507 }
 0x1c9   :  { %v218_v31 = vadd.f32 1.0, %v508_v30 }
 0x1cb   :  { %509 = vrcp.f32 %v218_v31 }
 0x1d8   :  { %v510_v32 = vpop.eup %509 }
 0x1d9   :  { %v221_v33 = vmul.f32 %v510_v32, %v212_v27 }
 0x1db   :  { %487 = vmatmul.mubr.msk.f32.vlgmr.msra.gmra.mxu1 %vm231_vm3, %v221_v33 }
 0x1dc   :  { %497 = vmatprep.mubr.msk.f32.mxu1 %vm542_vm0, %v541_v1  ;;  %490 = vmatpush3.msra.mxu1 %v315_v34 }
 0x1dd   :  { %491 = vmatprep.subr.mxu1 %v541_v1 }
 0x1de   :  { %492 = vmatpush3.msra.mxu1 %v314_v35 }
 0x1df   :  { %493 = vmatprep.subr.mxu1 %v541_v1 }
 0x1e0   :  { %494 = vmatpush3.msra.mxu1 %v313_v36 }
 0x1e1   :  { %495 = vmatprep.subr.mxu1 %v541_v1 }
 0x1e2   :  { %496 = vmatpush3.msra.mxu1 %v312_v37 }
 0x29b   :  { %v301_v39 = vpop.f32.mrf.mxu1 }
 0x29c   :  { %v302_v40 = vadd.f32 %v424_v38, %v301_v39 }
 0x29d   :  { %v488_v41 = vpop.f32.mrf.mxu1 }
 0x29e   :  { %v426_v42 = vmul.f32 -1.442695, %v302_v40 }
 0x2a0   :  { %511 = vpow2.f32 %v426_v42 }
 0x2ad   :  { %v512_v43 = vpop.eup %511 }
 0x2ae   :  { %v308_v44 = vadd.f32 1.0, %v512_v43 }
 0x2b0   :  { %513 = vrcp.f32 %v308_v44 }
 0x2bd   :  { %v514_v45 = vpop.eup %513 }
 0x2be   :  { %v311_v46 = vmul.f32 %v514_v45, %v302_v40 }
 0x2c0   :  { %498 = vmatmul.mubr.msk.f32.vlgmr.msra.gmra.mxu1 %vm141_vm2, %v311_v46 }
 0x380   :  { %v392_v48 = vpop.f32.mrf.mxu1 }
 0x381   :  { %v393_v49 = vadd.f32 %v427_v47, %v392_v48 }
 0x382   :  { %v499_v50 = vpop.f32.mrf.mxu1 }
 0x383   :  { %v429_v51 = vmul.f32 -1.442695, %v393_v49 }
 0x385   :  { %515 = vpow2.f32 %v429_v51 }
 0x392   :  { %v516_v52 = vpop.eup %515 }
 0x393   :  { %v399_v53 = vadd.f32 1.0, %v516_v52 }
 0x395   :  { %517 = vrcp.f32 %v399_v53 }
 0x3a2   :  { %v518_v54 = vpop.eup %517 }
 0x3a3   :  { %v402_v55 = vmul.f32 %v518_v54, %v393_v49 }
 0x3a5   :  { %403 = vst.msk [vmem:[#allocation2] sm:$0xff] %vm49_vm1, %v402_v55 }
 0x3a6   :  { %530 = shalt.err (!%p527_p4)
}
 0x3a7   :  { %413 = dma.vmem_to_hbm [thread:$0]  %s411_s7, 128, %s705_s9, [#allocation3]  }
 0x3a8   :  { %539 = dma.done.wait [#allocation3], 128  }
 0x3a9   :  { %540 = vsyncadd [#allocation3], 4294967168 }
 0x3aa   :  { %417 = vsyncpa [#allocation3], 1 }

</bundles_post_ra>
